<compile_context>
chip_gen: v7x
topology: tpu7x:2x2x1
jax: 0.10.0
libtpu: 0.0.40
codegen_flags: <defaults>
</compile_context>

<pallas_src>
import jax
import jax.numpy as jnp
from jax.experimental import pallas as pl
from jax.experimental.pallas import tpu as pltpu


# Logical layer sizes from the PyTorch module.
D_IN = 100          # 10 x 10 input, flattened
H_BIG = 30
H_SMALL = 16
D_OUT = 100

MAX_BATCH_TILE = 2048   # rows per grid step (multiple of 8)


# ----------------------------------------------------------------------------
# Kernel: fused  x @ W1 + b1 -> relu -> @ W2 + b2 -> sigmoid
#                  @ W3 + b3 -> relu -> @ W4 + b4 -> sigmoid
# Weights are pre-transposed to (in, out) and stored in bf16; all four dots are
# single-pass bf16 MXU matmuls with f32 accumulation.  Intermediates never
# leave VMEM.
# ----------------------------------------------------------------------------
def ae_forward_kernel(x_ref,
                      w1_ref, b1_ref,
                      w2_ref, b2_ref,
                      w3_ref, b3_ref,
                      w4_ref, b4_ref,
                      o_ref):
    x = x_ref[...].astype(jnp.bfloat16)                               # (TB, 100)

    # encoder
    h1 = jnp.dot(x, w1_ref[...], preferred_element_type=jnp.float32) + b1_ref[...]
    h1 = jnp.maximum(h1, 0.0)                                         # ReLU      (TB, 30)
    z = jnp.dot(h1.astype(jnp.bfloat16), w2_ref[...],
                preferred_element_type=jnp.float32) + b2_ref[...]
    z = jax.nn.sigmoid(z)                                             # sigmoid   (TB, 16)

    # decoder
    h2 = jnp.dot(z.astype(jnp.bfloat16), w3_ref[...],
                 preferred_element_type=jnp.float32) + b3_ref[...]
    h2 = jnp.maximum(h2, 0.0)                                         # ReLU      (TB, 30)
    y = jnp.dot(h2.astype(jnp.bfloat16), w4_ref[...],
                preferred_element_type=jnp.float32) + b4_ref[...]
    y = jax.nn.sigmoid(y)                                             # sigmoid   (TB, 100)

    o_ref[...] = y.astype(o_ref.dtype)


# ----------------------------------------------------------------------------
# Wrapper
# ----------------------------------------------------------------------------
def _pick_batch_tile(n_rows, max_tile=MAX_BATCH_TILE):
    """Rows per grid step.

    * tiny batches: one tile equal to the full batch (always layout-legal);
    * otherwise: a multiple of 8, <= max_tile, chosen so the grid has at least
      2 steps (lets the "parallel" batch axis shard across both v7x TCs).
    The ragged last tile is handled by Pallas masked boundary stores.
    """
    if n_rows <= 8:
        return n_rows
    n_steps = max(2, -(-n_rows // max_tile))      # ceil-div, at least 2 steps
    tb = -(-n_rows // n_steps)
    tb = ((tb + 7) // 8) * 8                      # round up to multiple of 8
    return min(tb, max_tile)


def ae_forward(x_nchw, params):
    """x_nchw: (B, C, H, W) with C*H*W == 100 (e.g. (B, 1, 10, 10))."""
    w1, b1, w2, b2, w3, b3, w4, b4 = params

    # x.view(-1, 100).  No padding: the kernel consumes the 100-wide rows directly.
    x2d = x_nchw.reshape(-1, D_IN).astype(jnp.float32)
    n_rows = x2d.shape[0]

    # Weights in bf16 (single-pass MXU); biases stay f32 (added to the f32 acc).
    w1b = w1.astype(jnp.bfloat16)
    w2b = w2.astype(jnp.bfloat16)
    w3b = w3.astype(jnp.bfloat16)
    w4b = w4.astype(jnp.bfloat16)

    tb = _pick_batch_tile(n_rows)
    grid = (pl.cdiv(n_rows, tb),)

    # Streamed (double-buffered) batch tiles for x / out; full-array,
    # constant-index (VMEM-resident) blocks for the weights & biases.
    x_spec = pl.BlockSpec((tb, D_IN), lambda i: (i, 0))
    out_spec = pl.BlockSpec((tb, D_OUT), lambda i: (i, 0))

    def _resident(shape):
        return pl.BlockSpec(shape, lambda i: (0, 0))

    out2d = pl.pallas_call(
        ae_forward_kernel,
        out_shape=jax.ShapeDtypeStruct((n_rows, D_OUT), jnp.float32),
        grid=grid,
        in_specs=[
            x_spec,
            _resident(w1b.shape), _resident(b1.shape),
            _resident(w2b.shape), _resident(b2.shape),
            _resident(w3b.shape), _resident(b3.shape),
            _resident(w4b.shape), _resident(b4.shape),
        ],
        out_specs=out_spec,
        compiler_params=pltpu.CompilerParams(
            dimension_semantics=("parallel",),    # megacore sharding on v7x
            vmem_limit_bytes=32 * 1024 * 1024,    # headroom for 2048-row tiles on v5e
        ),
    )(x2d, w1b, b1, w2b, b2, w3b, b3, w4b, b4)

    # x.view(-1, 10, 10)
    return out2d.reshape(-1, 10, 10)


# ----------------------------------------------------------------------------
# Deterministic parameter init (mimics nn.Linear default: U(-1/sqrt(in), 1/sqrt(in))).
# Weights stored transposed as (in_features, out_features); biases as (1, out).
# ----------------------------------------------------------------------------
def init_params(key):
    dims = [(D_IN, H_BIG),      # enc_fc1
            (H_BIG, H_SMALL),   # enc_fc2
            (H_SMALL, H_BIG),   # dec_fc1
            (H_BIG, D_OUT)]     # dec_fc2
    params = []
    for (fan_in, fan_out) in dims:
        key, kw, kb = jax.random.split(key, 3)
        bound = 1.0 / (fan_in ** 0.5)
        w = jax.random.uniform(kw, (fan_in, fan_out), jnp.float32, -bound, bound)
        b = jax.random.uniform(kb, (1, fan_out), jnp.float32, -bound, bound)
        params += [w, b]
    return tuple(params)


# Pure-JAX f32 reference for a sanity check.
def ae_forward_ref(x_nchw, params):
    w1, b1, w2, b2, w3, b3, w4, b4 = params
    x = x_nchw.reshape(-1, D_IN).astype(jnp.float32)
    x = jax.nn.relu(x @ w1 + b1)
    x = jax.nn.sigmoid(x @ w2 + b2)
    x = jax.nn.relu(x @ w3 + b3)
    x = jax.nn.sigmoid(x @ w4 + b4)
    return x.reshape(-1, 10, 10)


# TODO(synk): auto_enc_cost (BCE loss) and the Adam optimizer are training-only
# and not part of forward(); they are not implemented here.

if __name__ == "__main__":
    key = jax.random.PRNGKey(0)
    kp, kx1, kx2 = jax.random.split(key, 3)

    params = init_params(kp)

    # Small test: batch=2, channel=1, 10x10 -> flattens to (2, 100).
    x_small = jax.random.uniform(kx1, (2, 1, 10, 10), jnp.float32)
    out_small = jax.block_until_ready(ae_forward(x_small, params))
    ref_small = ae_forward_ref(x_small, params)
    assert out_small.shape == (2, 10, 10), out_small.shape
    # bf16 MXU inputs w/ f32 accumulation: compare to the f32 reference loosely.
    assert jnp.allclose(out_small, ref_small, atol=2e-2, rtol=2e-2), "small-batch mismatch"

    # Multi-tile test: 1040 rows -> 2 grid steps (520 rows each), exercises the
    # batch-tiled pipeline, the >=2-step (megacore) grid, and boundary handling.
    x_big = jax.random.uniform(kx2, (1040, 1, 10, 10), jnp.float32)
    out_big = jax.block_until_ready(ae_forward(x_big, params))
    ref_big = ae_forward_ref(x_big, params)
    assert out_big.shape == (1040, 10, 10), out_big.shape
    assert jnp.allclose(out_big, ref_big, atol=2e-2, rtol=2e-2), "tiled-batch mismatch"

    print("KERNEL_OK")
</pallas_src>

<mosaic_0001>
module attributes {stable_mosaic.version = 11 : i64} {
  func.func @ae_forward_kernel(%arg0: i32, %arg1: memref<2x100xf32, #tpu.memory_space<vmem>>, %arg2: memref<100x30xbf16, #tpu.memory_space<vmem>>, %arg3: memref<1x30xf32, #tpu.memory_space<vmem>>, %arg4: memref<30x16xbf16, #tpu.memory_space<vmem>>, %arg5: memref<1x16xf32, #tpu.memory_space<vmem>>, %arg6: memref<16x30xbf16, #tpu.memory_space<vmem>>, %arg7: memref<1x30xf32, #tpu.memory_space<vmem>>, %arg8: memref<30x100xbf16, #tpu.memory_space<vmem>>, %arg9: memref<1x100xf32, #tpu.memory_space<vmem>>, %arg10: memref<2x100xf32, #tpu.memory_space<vmem>>) attributes {dimension_semantics = [#tpu.dimension_semantics<parallel>], iteration_bounds = array<i64: 1>, scalar_prefetch = 0 : i64, scratch_operands = 0 : i64, tpu.core_type = #tpu.core_type<tc>, window_params = [{transform_indices = @transform_0, window_bounds = array<i64: 2, 100>}, {pipeline_mode = #tpu.pipeline_mode<synchronous>, transform_indices = @transform_1, window_bounds = array<i64: 100, 30>}, {pipeline_mode = #tpu.pipeline_mode<synchronous>, transform_indices = @transform_2, window_bounds = array<i64: 1, 30>}, {pipeline_mode = #tpu.pipeline_mode<synchronous>, transform_indices = @transform_3, window_bounds = array<i64: 30, 16>}, {pipeline_mode = #tpu.pipeline_mode<synchronous>, transform_indices = @transform_4, window_bounds = array<i64: 1, 16>}, {pipeline_mode = #tpu.pipeline_mode<synchronous>, transform_indices = @transform_5, window_bounds = array<i64: 16, 30>}, {pipeline_mode = #tpu.pipeline_mode<synchronous>, transform_indices = @transform_6, window_bounds = array<i64: 1, 30>}, {pipeline_mode = #tpu.pipeline_mode<synchronous>, transform_indices = @transform_7, window_bounds = array<i64: 30, 100>}, {pipeline_mode = #tpu.pipeline_mode<synchronous>, transform_indices = @transform_8, window_bounds = array<i64: 1, 100>}, {transform_indices = @transform_9, window_bounds = array<i64: 2, 100>}]} {
    %c0 = arith.constant 0 : index
    %c0_0 = arith.constant 0 : index
    %0 = vector.load %arg1[%c0, %c0_0] : memref<2x100xf32, #tpu.memory_space<vmem>>, vector<2x100xf32>
    %1 = arith.truncf %0 : vector<2x100xf32> to vector<2x100xbf16>
    %c0_1 = arith.constant 0 : index
    %c0_2 = arith.constant 0 : index
    %2 = vector.load %arg2[%c0_1, %c0_2] : memref<100x30xbf16, #tpu.memory_space<vmem>>, vector<100x30xbf16>
    %cst = arith.constant dense<0.000000e+00> : vector<2x30xf32>
    %3 = tpu.matmul %1, %2, %cst {dimension_numbers = #tpu.dot_dimension_numbers<[1], [0], [0], [1], [0, 0, 1, 1], [], []>} : vector<2x100xbf16>, vector<100x30xbf16>, vector<2x30xf32> -> vector<2x30xf32>
    %c0_3 = arith.constant 0 : index
    %c0_4 = arith.constant 0 : index
    %4 = vector.load %arg3[%c0_3, %c0_4] : memref<1x30xf32, #tpu.memory_space<vmem>>, vector<1x30xf32>
    %5 = vector.broadcast %4 : vector<1x30xf32> to vector<2x30xf32>
    %6 = arith.addf %3, %5 : vector<2x30xf32>
    %cst_5 = arith.constant 0.000000e+00 : f32
    %7 = vector.broadcast %cst_5 : f32 to vector<2x30xf32>
    %8 = arith.maximumf %6, %7 : vector<2x30xf32>
    %9 = arith.truncf %8 : vector<2x30xf32> to vector<2x30xbf16>
    %c0_6 = arith.constant 0 : index
    %c0_7 = arith.constant 0 : index
    %10 = vector.load %arg4[%c0_6, %c0_7] : memref<30x16xbf16, #tpu.memory_space<vmem>>, vector<30x16xbf16>
    %cst_8 = arith.constant dense<0.000000e+00> : vector<2x16xf32>
    %11 = tpu.matmul %9, %10, %cst_8 {dimension_numbers = #tpu.dot_dimension_numbers<[1], [0], [0], [1], [0, 0, 1, 1], [], []>} : vector<2x30xbf16>, vector<30x16xbf16>, vector<2x16xf32> -> vector<2x16xf32>
    %c0_9 = arith.constant 0 : index
    %c0_10 = arith.constant 0 : index
    %12 = vector.load %arg5[%c0_9, %c0_10] : memref<1x16xf32, #tpu.memory_space<vmem>>, vector<1x16xf32>
    %13 = vector.broadcast %12 : vector<1x16xf32> to vector<2x16xf32>
    %14 = arith.addf %11, %13 : vector<2x16xf32>
    %15 = arith.negf %14 : vector<2x16xf32>
    %16 = math.exp %15 : vector<2x16xf32>
    %cst_11 = arith.constant 1.000000e+00 : f32
    %17 = vector.broadcast %cst_11 : f32 to vector<2x16xf32>
    %18 = arith.addf %17, %16 : vector<2x16xf32>
    %19 = arith.divf %17, %18 : vector<2x16xf32>
    %20 = arith.truncf %19 : vector<2x16xf32> to vector<2x16xbf16>
    %c0_12 = arith.constant 0 : index
    %c0_13 = arith.constant 0 : index
    %21 = vector.load %arg6[%c0_12, %c0_13] : memref<16x30xbf16, #tpu.memory_space<vmem>>, vector<16x30xbf16>
    %cst_14 = arith.constant dense<0.000000e+00> : vector<2x30xf32>
    %22 = tpu.matmul %20, %21, %cst_14 {dimension_numbers = #tpu.dot_dimension_numbers<[1], [0], [0], [1], [0, 0, 1, 1], [], []>} : vector<2x16xbf16>, vector<16x30xbf16>, vector<2x30xf32> -> vector<2x30xf32>
    %c0_15 = arith.constant 0 : index
    %c0_16 = arith.constant 0 : index
    %23 = vector.load %arg7[%c0_15, %c0_16] : memref<1x30xf32, #tpu.memory_space<vmem>>, vector<1x30xf32>
    %24 = vector.broadcast %23 : vector<1x30xf32> to vector<2x30xf32>
    %25 = arith.addf %22, %24 : vector<2x30xf32>
    %cst_17 = arith.constant 0.000000e+00 : f32
    %26 = vector.broadcast %cst_17 : f32 to vector<2x30xf32>
    %27 = arith.maximumf %25, %26 : vector<2x30xf32>
    %28 = arith.truncf %27 : vector<2x30xf32> to vector<2x30xbf16>
    %c0_18 = arith.constant 0 : index
    %c0_19 = arith.constant 0 : index
    %29 = vector.load %arg8[%c0_18, %c0_19] : memref<30x100xbf16, #tpu.memory_space<vmem>>, vector<30x100xbf16>
    %cst_20 = arith.constant dense<0.000000e+00> : vector<2x100xf32>
    %30 = tpu.matmul %28, %29, %cst_20 {dimension_numbers = #tpu.dot_dimension_numbers<[1], [0], [0], [1], [0, 0, 1, 1], [], []>} : vector<2x30xbf16>, vector<30x100xbf16>, vector<2x100xf32> -> vector<2x100xf32>
    %c0_21 = arith.constant 0 : index
    %c0_22 = arith.constant 0 : index
    %31 = vector.load %arg9[%c0_21, %c0_22] : memref<1x100xf32, #tpu.memory_space<vmem>>, vector<1x100xf32>
    %32 = vector.broadcast %31 : vector<1x100xf32> to vector<2x100xf32>
    %33 = arith.addf %30, %32 : vector<2x100xf32>
    %34 = arith.negf %33 : vector<2x100xf32>
    %35 = math.exp %34 : vector<2x100xf32>
    %cst_23 = arith.constant 1.000000e+00 : f32
    %36 = vector.broadcast %cst_23 : f32 to vector<2x100xf32>
    %37 = arith.addf %36, %35 : vector<2x100xf32>
    %38 = arith.divf %36, %37 : vector<2x100xf32>
    %c0_24 = arith.constant 0 : index
    %c0_25 = arith.constant 0 : index
    %39 = vector.load %arg10[%c0_24, %c0_25] : memref<2x100xf32, #tpu.memory_space<vmem>>, vector<2x100xf32>
    tpu.vector_store %arg10[%c0_24, %c0_25], %38 {strides = array<i32>} : memref<2x100xf32, #tpu.memory_space<vmem>>, vector<2x100xf32>,
    return
  }
  func.func @transform_0(%arg0: i32) -> (i32, i32) {
    %c0_i32 = arith.constant 0 : i32
    %c0_i32_0 = arith.constant 0 : i32
    return %arg0, %c0_i32 : i32, i32
  }
  func.func @transform_1(%arg0: i32) -> (i32, i32) {
    %c0_i32 = arith.constant 0 : i32
    %c0_i32_0 = arith.constant 0 : i32
    %c0_i32_1 = arith.constant 0 : i32
    return %c0_i32, %c0_i32_0 : i32, i32
  }
  func.func @transform_2(%arg0: i32) -> (i32, i32) {
    %c0_i32 = arith.constant 0 : i32
    %c0_i32_0 = arith.constant 0 : i32
    %c0_i32_1 = arith.constant 0 : i32
    return %c0_i32, %c0_i32_0 : i32, i32
  }
  func.func @transform_3(%arg0: i32) -> (i32, i32) {
    %c0_i32 = arith.constant 0 : i32
    %c0_i32_0 = arith.constant 0 : i32
    %c0_i32_1 = arith.constant 0 : i32
    return %c0_i32, %c0_i32_0 : i32, i32
  }
  func.func @transform_4(%arg0: i32) -> (i32, i32) {
    %c0_i32 = arith.constant 0 : i32
    %c0_i32_0 = arith.constant 0 : i32
    %c0_i32_1 = arith.constant 0 : i32
    return %c0_i32, %c0_i32_0 : i32, i32
  }
  func.func @transform_5(%arg0: i32) -> (i32, i32) {
    %c0_i32 = arith.constant 0 : i32
    %c0_i32_0 = arith.constant 0 : i32
    %c0_i32_1 = arith.constant 0 : i32
    return %c0_i32, %c0_i32_0 : i32, i32
  }
  func.func @transform_6(%arg0: i32) -> (i32, i32) {
    %c0_i32 = arith.constant 0 : i32
    %c0_i32_0 = arith.constant 0 : i32
    %c0_i32_1 = arith.constant 0 : i32
    return %c0_i32, %c0_i32_0 : i32, i32
  }
  func.func @transform_7(%arg0: i32) -> (i32, i32) {
    %c0_i32 = arith.constant 0 : i32
    %c0_i32_0 = arith.constant 0 : i32
    %c0_i32_1 = arith.constant 0 : i32
    return %c0_i32, %c0_i32_0 : i32, i32
  }
  func.func @transform_8(%arg0: i32) -> (i32, i32) {
    %c0_i32 = arith.constant 0 : i32
    %c0_i32_0 = arith.constant 0 : i32
    %c0_i32_1 = arith.constant 0 : i32
    return %c0_i32, %c0_i32_0 : i32, i32
  }
  func.func @transform_9(%arg0: i32) -> (i32, i32) {
    %c0_i32 = arith.constant 0 : i32
    %c0_i32_0 = arith.constant 0 : i32
    return %arg0, %c0_i32 : i32, i32
  }
}

</mosaic_0001>

<bundles_post_ra>
// kernel: tpu_custom_call.1
= control target key start
LH: loop header
LB: loop body
LE: loop exit
PB: predicated region body
PF: predicated region fallthrough
CT: control target
= control target key end

     0   :  { %v498_v1 = vmov 0.0   ;;  %vm499_vm0 = vmmov 0   ;;  %s638_s0 = inlined_call_operand.vmem [shape: f32[2,100], index: 0, kind: input, shape index: {}]   ;;  %s639_s1 = inlined_call_operand.vmem [shape: bf16[100,30], index: 1, kind: input, shape index: {}]   ;;  %s640_s2 = inlined_call_operand.vmem [shape: f32[1,30], index: 2, kind: input, shape index: {}]   ;;  %s641_s3 = inlined_call_operand.vmem [shape: bf16[30,16], index: 3, kind: input, shape index: {}]   ;;  %s642_s4 = inlined_call_operand.vmem [shape: f32[1,16], index: 4, kind: input, shape index: {}]   ;;  %s643_s5 = inlined_call_operand.vmem [shape: bf16[16,30], index: 5, kind: input, shape index: {}]   ;;  %s644_s6 = inlined_call_operand.vmem [shape: f32[1,30], index: 6, kind: input, shape index: {}]   ;;  %s645_s7 = inlined_call_operand.vmem [shape: bf16[30,100], index: 7, kind: input, shape index: {}]   ;;  %s646_s8 = inlined_call_operand.vmem [shape: f32[1,100], index: 8, kind: input, shape index: {}]   ;;  %s647_s9 = inlined_call_operand.hbm [shape: f32[2,100], index: 9, kind: output, shape index: {}]  }
   0x1   :  { %v454_v0 = vld [vmem:[%s639_s1] sm:$0xff]   ;;  %411 = vmatprep.subr.bf16.mxu0 %v498_v1  ;;  %429 = vmatprep.subr.bf16.mxu1 %v498_v1  ;;  %v455_v2 = vld [vmem:[%s639_s1 + $0x8] sm:$0xff]   ;;  %v456_v3 = vld [vmem:[%s639_s1 + $0x10] sm:$0xff]  }
   0x2   :  { %412 = vmatpush3.bf16.msra.mxu0 %v454_v0  ;;  %425 = vmatprep.mubr.msk.bf16.mxu0 %vm499_vm0, %v498_v1  ;;  %v457_v4 = vld [vmem:[%s639_s1 + $0x18] sm:$0xff]  }
   0x3   :  { %413 = vmatprep.subr.bf16.mxu0 %v498_v1  ;;  %433 = vmatprep.mubr.msk.bf16.mxu1 %vm499_vm0, %v498_v1 }
   0x6   :  { %414 = vmatpush3.bf16.msra.mxu0 %v455_v2 }
   0x7   :  { %415 = vmatprep.subr.bf16.mxu0 %v498_v1 }
   0xa   :  { %416 = vmatpush3.bf16.msra.mxu0 %v456_v3 }
   0xb   :  { %417 = vmatprep.subr.bf16.mxu0 %v498_v1 }
   0xc   :  { %14 = vsyncpa [#allocation3], 0  ;;  %v458_v5 = vld [vmem:[%s639_s1 + $0x20] sm:$0xff]   ;;  %v459_v6 = vld [vmem:[%s639_s1 + $0x28] sm:$0xff]   ;;  %vm99_vm1 = vcmask 1041408   ;;  %vm95_vm2 = vcmask 818176  }
   0xd   :  { %v460_v7 = vld [vmem:[%s639_s1 + $0x30] ss:$0 sps:$4 sm:$0x33]   ;;  %v34_v8 = vld [vmem:[%s638_s0] sm:$0x3]  ;;  %vm171_vm3 = vcmask 1046528  }
   0xe   :  { %418 = vmatpush3.bf16.msra.mxu0 %v457_v4  ;;  %v101_v9 = vsel %vm99_vm1, %v460_v7, 0  ;;  %v35_v10 = vpack.c.bf16 %v34_v8, %v34_v8  ;;  %v461_v11 = vld [vmem:[%s641_s3] sm:$0xff]   ;;  %v462_v12 = vld [vmem:[%s641_s3 + $0x8] sm:$0x7f]   ;;  %vm167_vm4 = vcmask 244736   ;;  %vm237_vm5 = vcmask 130048  }
   0xf   :  { %419 = vmatprep.subr.bf16.mxu0 %v498_v1  ;;  %430 = vmatpush3.bf16.msra.mxu1 %v461_v11  ;;  %v173_v13 = vsel %vm171_vm3, %v462_v12, 0  ;;  %v373_v14 = vld [vmem:[%s640_s2] ss:$0 sm:$0xff]  ;;  %v465_v35 = vld [vmem:[%s645_s7 + $0x8] sm:$0x7f]   ;;  %vm357_vm6 = vcmask 812032  }
  0x10   :  { %431 = vmatprep.subr.bf16.mxu1 %v498_v1  ;;  %v463_v22 = vld [vmem:[%s643_s5] sm:$0xff]   ;;  %v309_v36 = vsel %vm171_vm3, %v465_v35, 0 }
  0x11   :  { %v382_v23 = vld [vmem:[%s642_s4] ss:$0 sm:$0xff] }
  0x12   :  { %420 = vmatpush3.bf16.msra.mxu0 %v458_v5  ;;  %v464_v33 = vld [vmem:[%s645_s7] sm:$0xff]  }
  0x13   :  { %421 = vmatprep.subr.bf16.mxu0 %v498_v1  ;;  %432 = vmatpush3.bf16.msra.mxu1 %v173_v13  ;;  %v387_v37 = vld [vmem:[%s644_s6] ss:$0 sm:$0xff]  ;;  %s500_s6 = smov [#allocation2]  }
  0x14   :  { %437 = vmatprep.subr.bf16.mxu1 %v498_v1  ;;  %v390_v45 = vld [vmem:[%s646_s8] ss:$0 sm:$0xff]  ;;  %s365_s7 = sshll.u32 %s500_s6, 4  ;;  %s366_s7 = int_to_ptr.vmem [resolvable:$true] %s365_s7 }
  0x15   :  { %s474_s16 = scalar_lea.vmem %s366_s7, 32  ;;  %p479_p1 = scmp.lt.s32.totalorder %s366_s7, %s366_s7 }
  0x16   :  { %422 = vmatpush3.bf16.msra.mxu0 %v459_v6  ;;  %p475_p0 = scmp.ne.s32.totalorder %s366_s7, %s474_s16  ;;  %p480_p2 = scmp.lt.s32.totalorder %s474_s16, %s474_s16 }
  0x17   :  { %423 = vmatprep.subr.bf16.mxu0 %v498_v1 }
  0x18   :  { %p481_p3 = por %p480_p2, %p479_p1 }
  0x1a   :  { %424 = vmatpush3.bf16.msra.mxu0 %v101_v9  ;;  %p482_p4 = pnand %p481_p3, %p475_p0 }
  0x1d   :  { %426 = vmatmul.mubr.msk.bf16.vlgmr.msra.gmra.mrb[0].mxu0 %vm95_vm2, %v35_v10 }
  0xf0   :  { %v137_v15 = vpop.f32.mrb[0].mxu0 }
  0xf1   :  { %v138_v16 = vadd.f32 %v373_v14, %v137_v15  ;;  %v427_v17 = vpop.f32.mrb[1].mxu0 }
  0xf2   :  { %v140_v18 = vpop.f32.mrb[2].mxu0 }
  0xf3   :  { %v143_v19 = vmax.f32 %v138_v16, 0.0  ;;  %v428_v20 = vpop.f32.mrb[3].mxu0 }
  0xf5   :  { %v144_v21 = vpack.c.bf16 %v143_v19, %v143_v19 }
  0xf7   :  { %434 = vmatmul.mubr.msk.bf16.vlgmr.msra.gmra.mrb[0].mxu1 %vm167_vm4, %v144_v21 }
  0xf8   :  { %439 = vmatprep.mubr.msk.bf16.mxu1 %vm499_vm0, %v498_v1  ;;  %438 = vmatpush3.bf16.msra.mxu1 %v463_v22 }
  0xf9   :  { %443 = vmatprep.subr.bf16.mxu1 %v498_v1 }
 0x1ca   :  { %v209_v24 = vpop.f32.mrb[0].mxu1 }
 0x1cb   :  { %v210_v25 = vadd.f32 %v382_v23, %v209_v24  ;;  %v435_v26 = vpop.f32.mrb[1].mxu1 }
 0x1cc   :  { %v212_v27 = vpop.f32.mrb[2].mxu1 }
 0x1cd   :  { %v386_v28 = vmul.f32 -1.442695, %v210_v25  ;;  %v436_v29 = vpop.f32.mrb[3].mxu1 }
 0x1cf   :  { %466 = vpow2.f32 %v386_v28 }
 0x1d9   :  { %v467_v30 = vpop.eup %466 }
 0x1da   :  { %v218_v31 = vadd.f32 1.0, %v467_v30 }
 0x1dc   :  { %468 = vrcp.f32 %v218_v31 }
 0x1e6   :  { %v469_v32 = vpop.eup %468 }
 0x1e7   :  { %v221_v34 = vpack.c.bf16 %v469_v32, %v469_v32 }
 0x1e9   :  { %440 = vmatmul.mubr.msk.bf16.vlgmr.msra.gmra.mrb[4].mxu1 %vm237_vm5, %v221_v34 }
 0x1ea   :  { %444 = vmatpush3.bf16.msra.mxu1 %v464_v33  ;;  %447 = vmatprep.mubr.msk.bf16.mxu1 %vm499_vm0, %v498_v1 }
 0x1eb   :  { %445 = vmatprep.subr.bf16.mxu1 %v498_v1 }
 0x1ee   :  { %446 = vmatpush3.bf16.msra.mxu1 %v309_v36 }
 0x2bc   :  { %v275_v38 = vpop.f32.mrb[4].mxu1 }
 0x2bd   :  { %v276_v39 = vadd.f32 %v387_v37, %v275_v38  ;;  %v441_v40 = vpop.f32.mrb[5].mxu1 }
 0x2be   :  { %v278_v41 = vpop.f32.mrb[6].mxu1 }
 0x2bf   :  { %v281_v42 = vmax.f32 %v276_v39, 0.0  ;;  %v442_v43 = vpop.f32.mrb[7].mxu1 }
 0x2c1   :  { %v282_v44 = vpack.c.bf16 %v281_v42, %v281_v42 }
 0x2c3   :  { %448 = vmatmul.mubr.msk.bf16.vlgmr.msra.gmra.mrb[8].mxu1 %vm167_vm4, %v282_v44 }
 0x396   :  { %v345_v46 = vpop.f32.mrb[8].mxu1 }
 0x397   :  { %v346_v47 = vadd.f32 %v390_v45, %v345_v46  ;;  %v449_v48 = vpop.f32.mrb[9].mxu1 }
 0x398   :  { %v348_v49 = vpop.f32.mrb[10].mxu1 }
 0x399   :  { %v394_v50 = vmul.f32 -1.442695, %v346_v47  ;;  %v450_v51 = vpop.f32.mrb[11].mxu1 }
 0x39b   :  { %470 = vpow2.f32 %v394_v50 }
 0x3a5   :  { %v471_v52 = vpop.eup %470 }
 0x3a6   :  { %v354_v53 = vadd.f32 1.0, %v471_v52 }
 0x3a8   :  { %472 = vrcp.f32 %v354_v53 }
 0x3b2   :  { %v473_v54 = vpop.eup %472 }
 0x3b3   :  { %358 = vst.msk [vmem:[#allocation2] sm:$0x3] %vm357_vm6, %v473_v54 }
 0x3b4   :  { %485 = shalt.err (!%p482_p4)
}
 0x3b5   :  { %s486_s18 = scalar_lea.hbm %s647_s9, 32 }
 0x3b6   :  { %p487_p5 = scmp.ne.s32.totalorder %s647_s9, %s486_s18  ;;  %p490_p6 = scmp.lt.u32.totalorder %s486_s18, %s647_s9 }
 0x3b8   :  { %p492_p7 = pnand %p490_p6, %p487_p5 }
 0x3ba   :  { %495 = shalt.err (!%p492_p7)
}
 0x3bb   :  { %368 = dma.vmem_to_hbm [thread:$0]  %s366_s7, 32, %s647_s9, [#allocation3]  }
 0x3bc   :  { %496 = dma.done.wait [#allocation3], 32  }
 0x3bd   :  { %497 = vsyncadd [#allocation3], 4294967264 }
 0x3be   :  { %372 = vsyncpa [#allocation3], 1 }

</bundles_post_ra>
